<compile_context>
chip_gen: v7x
topology: tpu7x:2x2x1
jax: 0.10.0
libtpu: 0.0.40
codegen_flags: <defaults>
</compile_context>

<pallas_src>
import jax
import jax.numpy as jnp
from jax.experimental import pallas as pl
from jax.experimental.pallas import tpu as pltpu

# ----------------------------- configuration --------------------------------
INPUT_SIZE1 = 4      # input_size1 (number of OD left attributes)
OD_TIME_STEP = 8     # T
RNN_UNIT = 32        # H (hidden size) -> 4H = 128 gates (one full lane dim)
BATCH = 2            # B


# ------------------------------- kernel --------------------------------------
def rnn_multiply_kernel(x_ref, w_ref, out_ref, gx_ref, h_ref):
    """
    x_ref  : (B_blk, T, D1)          input block
    w_ref  : (H + D1 + 3, 4H)        packed parameters (see header)
    out_ref: (B_blk*T, 1)            prediction, b-major / t-minor row order
    gx_ref : VMEM (T, B_blk, 4H)     staged non-recurrent gate contribution
    h_ref  : VMEM (T, B_blk, H)      per-step hidden states
    """
    b_blk, t_steps, d1 = x_ref.shape
    gdim = w_ref.shape[1]
    hdim = gdim // 4

    # ---- one-time unpack of the single packed parameter block --------------
    w_hh = w_ref[0:hdim, :]                                     # (H, 4H)
    w_x = w_ref[hdim:hdim + d1, :]                              # (D1, 4H)
    b_gate = w_ref[hdim + d1:hdim + d1 + 1, :]                  # (1, 4H)
    w_out = w_ref[hdim + d1 + 1:hdim + d1 + 2, 0:hdim]          # (1, H)
    b_out = w_ref[hdim + d1 + 2:hdim + d1 + 3, 0:1]             # (1, 1)

    # ---- non-recurrent precompute (off the serial h->h chain) --------------
    # fused input Linear + input->gate contribution + all biases, one matmul.
    x2 = x_ref[...].reshape(b_blk * t_steps, d1)                # b-major rows
    gates_pre = jnp.dot(x2, w_x, preferred_element_type=jnp.float32) + b_gate
    # Stage t-major into VMEM so per-step reads are clean leading-axis loads.
    # The b-major -> t-major interleave happens here, once, off the chain.
    for t in range(t_steps):
        rows = [gates_pre[b * t_steps + t:b * t_steps + t + 1, :]
                for b in range(b_blk)]
        gx_ref[t] = rows[0] if b_blk == 1 else jnp.concatenate(rows, axis=0)

    # ---- serial LSTM recurrence (T static, fully unrolled) ------------------
    # h0 = c0 = 0 (the module passes None to the LSTM)
    h = jnp.zeros((b_blk, hdim), jnp.float32)
    c = jnp.zeros((b_blk, hdim), jnp.float32)
    for t in range(t_steps):
        gates = gx_ref[t] + jnp.dot(h, w_hh,
                                    preferred_element_type=jnp.float32)  # (B,4H)
        # one EUP pass over the full 4H-lane gate vector (PyTorch i,f,g,o order)
        sig = jax.nn.sigmoid(gates)
        i_g = sig[:, 0 * hdim:1 * hdim]
        f_g = sig[:, 1 * hdim:2 * hdim]
        o_g = sig[:, 3 * hdim:4 * hdim]
        g_g = jnp.tanh(gates[:, 2 * hdim:3 * hdim])
        c = f_g * c + i_g * g_g
        h = o_g * jnp.tanh(c)
        h_ref[t] = h                      # off-chain store, no live-value stack

    # ---- output Linear: VPU multiply + lane reduce (N=1 column, skip MXU) ---
    h_all = h_ref[...]                                          # (T, B_blk, H)
    for b in range(b_blk):
        h_b = h_all[:, b, :]                                    # (T, H)
        out_b = jnp.sum(h_b * w_out, axis=-1, keepdims=True) + b_out   # (T, 1)
        out_ref[b * t_steps:(b + 1) * t_steps, :] = out_b       # b-major/t-minor


# ---------------------------- chip detection ----------------------------------
def _dual_tensorcore_chip():
    """True on chips with 2 TensorCores per chip (v7x); False on v5e/v6e."""
    try:
        kind = jax.devices()[0].device_kind.lower()
    except Exception:
        return False
    return ("v7" in kind) or ("7x" in kind)


# ------------------------------- wrapper --------------------------------------
def rnn_multiply_forward(x, packed_w, *, batch_parallel=None):
    """x: (B, T, D1) float32, packed_w: (H+D1+3, 4H) -> prediction (B*T, 1)."""
    B, T, D1 = x.shape
    G = packed_w.shape[1]
    H = G // 4

    if batch_parallel is None:
        batch_parallel = _dual_tensorcore_chip() and B > 1

    if batch_parallel:
        # v7x: shard the independent batch rows across the two TensorCores.
        grid = (B,)
        b_blk = 1
        x_spec = pl.BlockSpec((1, T, D1), lambda b: (b, 0, 0))
        w_spec = pl.BlockSpec(packed_w.shape, lambda b: (0, 0))
        out_spec = pl.BlockSpec((T, 1), lambda b: (b, 0))
        dims = ("parallel",)
    else:
        # v5e/v6e: single grid step, whole recurrence in one invocation.
        grid = (1,)
        b_blk = B
        x_spec = pl.BlockSpec((B, T, D1), lambda i: (0, 0, 0))
        w_spec = pl.BlockSpec(packed_w.shape, lambda i: (0, 0))
        out_spec = pl.BlockSpec((B * T, 1), lambda i: (0, 0))
        dims = ("arbitrary",)

    return pl.pallas_call(
        rnn_multiply_kernel,
        out_shape=jax.ShapeDtypeStruct((B * T, 1), jnp.float32),
        grid_spec=pltpu.PrefetchScalarGridSpec(
            num_scalar_prefetch=0,
            grid=grid,
            in_specs=[x_spec, w_spec],
            out_specs=out_spec,
            scratch_shapes=[
                pltpu.VMEM((T, b_blk, G), jnp.float32),   # t-major gate staging
                pltpu.VMEM((T, b_blk, H), jnp.float32),   # per-step hidden states
            ],
        ),
        compiler_params=pltpu.CompilerParams(dimension_semantics=dims),
    )(x, packed_w)


# --------------------------- parameter handling --------------------------------
def make_params(key, d1, h):
    """Raw PyTorch-equivalent parameters (pre-transposed to (in, out))."""
    ks = jax.random.split(key, 8)
    u = lambda k, shape, bound: jax.random.uniform(
        k, shape, jnp.float32, minval=-bound, maxval=bound)
    return {
        "w_in":  u(ks[0], (d1, 1), 1.0 / jnp.sqrt(d1)),       # Linear(d1,1).weight.T
        "b_in":  u(ks[1], (1, 1),  1.0 / jnp.sqrt(d1)),
        "w_ih":  u(ks[2], (1, 4 * h), 1.0 / jnp.sqrt(h)),      # LSTM weight_ih_l0.T
        "b_ih":  u(ks[3], (1, 4 * h), 1.0 / jnp.sqrt(h)),
        "w_hh":  u(ks[4], (h, 4 * h), 1.0 / jnp.sqrt(h)),      # LSTM weight_hh_l0.T
        "b_hh":  u(ks[5], (1, 4 * h), 1.0 / jnp.sqrt(h)),
        "w_out": u(ks[6], (h, 1), 1.0 / jnp.sqrt(h)),          # Linear(h,1).weight.T
        "b_out": u(ks[7], (1, 1), 1.0 / jnp.sqrt(h)),
    }


def pack_params(raw):
    """Fold + pack the 9 tiny parameters into one (H+D1+3, 4H) block (1 DMA)."""
    h = raw["w_hh"].shape[0]
    g = 4 * h
    w_x = raw["w_in"] @ raw["w_ih"]                                   # (D1, 4H)
    b_gate = raw["b_in"] * raw["w_ih"] + raw["b_ih"] + raw["b_hh"]    # (1, 4H)
    w_out_row = jnp.zeros((1, g), jnp.float32).at[0, :h].set(raw["w_out"][:, 0])
    b_out_row = jnp.zeros((1, g), jnp.float32).at[0, 0].set(raw["b_out"][0, 0])
    return jnp.concatenate(
        [raw["w_hh"], w_x, b_gate, w_out_row, b_out_row], axis=0
    ).astype(jnp.float32)                                             # (H+D1+3, 4H)


# ------------------------- pure-JAX reference (check) -------------------------
def rnn_multiply_reference(x, raw):
    B, T, D1 = x.shape
    H = raw["w_hh"].shape[0]
    z = x.reshape(-1, D1) @ raw["w_in"] + raw["b_in"]                 # (B*T, 1)
    z = z.reshape(B, T, 1)
    h = jnp.zeros((B, H), jnp.float32)
    c = jnp.zeros((B, H), jnp.float32)
    outs = []
    for t in range(T):
        gates = (z[:, t] @ raw["w_ih"] + raw["b_ih"]
                 + h @ raw["w_hh"] + raw["b_hh"])
        i_g = jax.nn.sigmoid(gates[:, 0 * H:1 * H])
        f_g = jax.nn.sigmoid(gates[:, 1 * H:2 * H])
        g_g = jnp.tanh(gates[:, 2 * H:3 * H])
        o_g = jax.nn.sigmoid(gates[:, 3 * H:4 * H])
        c = f_g * c + i_g * g_g
        h = o_g * jnp.tanh(c)
        outs.append(h)
    lstm_out = jnp.stack(outs, axis=1).reshape(-1, H)                 # (B*T, H)
    return lstm_out @ raw["w_out"] + raw["b_out"]                     # (B*T, 1)


# --------------------------------- main ---------------------------------------
if __name__ == "__main__":
    key = jax.random.PRNGKey(0)
    k_x, k_p = jax.random.split(key)

    x = jax.random.normal(k_x, (BATCH, OD_TIME_STEP, INPUT_SIZE1), jnp.float32)
    raw = make_params(k_p, INPUT_SIZE1, RNN_UNIT)
    packed = pack_params(raw)

    ref = rnn_multiply_reference(x, raw)

    # Default path (auto-selects single-grid on v5e/v6e, batch-parallel on v7x).
    pred = jax.block_until_ready(rnn_multiply_forward(x, packed))
    assert pred.shape == (BATCH * OD_TIME_STEP, 1)
    assert jnp.allclose(pred, ref, rtol=1e-4, atol=1e-4), "mismatch (default path)"

    # Also exercise the dual-TensorCore (v7x) configuration explicitly; it is
    # correct (just sequential) on single-TC chips as well.
    pred_par = jax.block_until_ready(
        rnn_multiply_forward(x, packed, batch_parallel=True))
    assert jnp.allclose(pred_par, ref, rtol=1e-4, atol=1e-4), "mismatch (parallel path)"

    print("KERNEL_OK")
</pallas_src>

<mosaic_0001>
module attributes {stable_mosaic.version = 11 : i64} {
  func.func @rnn_multiply_kernel(%arg0: i32, %arg1: memref<2x8x4xf32, #tpu.memory_space<vmem>>, %arg2: memref<39x128xf32, #tpu.memory_space<vmem>>, %arg3: memref<16x1xf32, #tpu.memory_space<vmem>>, %arg4: memref<8x2x128xf32, #tpu.memory_space<vmem>>, %arg5: memref<8x2x32xf32, #tpu.memory_space<vmem>>) attributes {dimension_semantics = [#tpu.dimension_semantics<arbitrary>], iteration_bounds = array<i64: 1>, scalar_prefetch = 0 : i64, scratch_operands = 2 : i64, tpu.core_type = #tpu.core_type<tc>, window_params = [{pipeline_mode = #tpu.pipeline_mode<synchronous>, transform_indices = @transform_0, window_bounds = array<i64: 2, 8, 4>}, {pipeline_mode = #tpu.pipeline_mode<synchronous>, transform_indices = @transform_1, window_bounds = array<i64: 39, 128>}, {pipeline_mode = #tpu.pipeline_mode<synchronous>, transform_indices = @transform_2, window_bounds = array<i64: 16, 1>}]} {
    %c0 = arith.constant 0 : index
    %c0_0 = arith.constant 0 : index
    %0 = vector.load %arg2[%c0, %c0_0] : memref<39x128xf32, #tpu.memory_space<vmem>>, vector<32x128xf32>
    %c32 = arith.constant 32 : index
    %c0_1 = arith.constant 0 : index
    %1 = vector.load %arg2[%c32, %c0_1] : memref<39x128xf32, #tpu.memory_space<vmem>>, vector<4x128xf32>
    %c36 = arith.constant 36 : index
    %c0_2 = arith.constant 0 : index
    %2 = vector.load %arg2[%c36, %c0_2] : memref<39x128xf32, #tpu.memory_space<vmem>>, vector<1x128xf32>
    %c37 = arith.constant 37 : index
    %c0_3 = arith.constant 0 : index
    %3 = vector.load %arg2[%c37, %c0_3] : memref<39x128xf32, #tpu.memory_space<vmem>>, vector<1x32xf32>
    %c38 = arith.constant 38 : index
    %c0_4 = arith.constant 0 : index
    %4 = vector.load %arg2[%c38, %c0_4] : memref<39x128xf32, #tpu.memory_space<vmem>>, vector<1x1xf32>
    %c0_5 = arith.constant 0 : index
    %c0_6 = arith.constant 0 : index
    %c0_7 = arith.constant 0 : index
    %5 = vector.load %arg1[%c0_5, %c0_6, %c0_7] : memref<2x8x4xf32, #tpu.memory_space<vmem>>, vector<2x8x4xf32>
    %6 = vector.shape_cast %5 : vector<2x8x4xf32> to vector<16x4xf32>
    %cst = arith.constant dense<0.000000e+00> : vector<16x128xf32>
    %7 = tpu.matmul %6, %1, %cst {dimension_numbers = #tpu.dot_dimension_numbers<[1], [0], [0], [1], [0, 0, 1, 1], [], []>} : vector<16x4xf32>, vector<4x128xf32>, vector<16x128xf32> -> vector<16x128xf32>
    %8 = vector.broadcast %2 : vector<1x128xf32> to vector<16x128xf32>
    %9 = arith.addf %7, %8 : vector<16x128xf32>
    %10 = vector.extract_strided_slice %9 {offsets = [0, 0], sizes = [1, 128], strides = [1, 1]} : vector<16x128xf32> to vector<1x128xf32>
    %11 = vector.extract_strided_slice %9 {offsets = [8, 0], sizes = [1, 128], strides = [1, 1]} : vector<16x128xf32> to vector<1x128xf32>
    %12 = tpu.concatenate %10, %11 in 0 : vector<1x128xf32>, vector<1x128xf32> -> vector<2x128xf32>
    %c0_8 = arith.constant 0 : index
    %c0_9 = arith.constant 0 : index
    %c0_10 = arith.constant 0 : index
    %13 = vector.load %arg4[%c0_8, %c0_9, %c0_10] : memref<8x2x128xf32, #tpu.memory_space<vmem>>, vector<1x2x128xf32>
    %14 = vector.shape_cast %13 : vector<1x2x128xf32> to vector<2x128xf32>
    %15 = vector.shape_cast %12 : vector<2x128xf32> to vector<1x2x128xf32>
    tpu.vector_store %arg4[%c0_8, %c0_9, %c0_10], %15 {strides = array<i32>} : memref<8x2x128xf32, #tpu.memory_space<vmem>>, vector<1x2x128xf32>,
    %16 = vector.extract_strided_slice %9 {offsets = [1, 0], sizes = [1, 128], strides = [1, 1]} : vector<16x128xf32> to vector<1x128xf32>
    %17 = vector.extract_strided_slice %9 {offsets = [9, 0], sizes = [1, 128], strides = [1, 1]} : vector<16x128xf32> to vector<1x128xf32>
    %18 = tpu.concatenate %16, %17 in 0 : vector<1x128xf32>, vector<1x128xf32> -> vector<2x128xf32>
    %c1 = arith.constant 1 : index
    %c0_11 = arith.constant 0 : index
    %c0_12 = arith.constant 0 : index
    %19 = vector.load %arg4[%c1, %c0_11, %c0_12] : memref<8x2x128xf32, #tpu.memory_space<vmem>>, vector<1x2x128xf32>
    %20 = vector.shape_cast %19 : vector<1x2x128xf32> to vector<2x128xf32>
    %21 = vector.shape_cast %18 : vector<2x128xf32> to vector<1x2x128xf32>
    tpu.vector_store %arg4[%c1, %c0_11, %c0_12], %21 {strides = array<i32>} : memref<8x2x128xf32, #tpu.memory_space<vmem>>, vector<1x2x128xf32>,
    %22 = vector.extract_strided_slice %9 {offsets = [2, 0], sizes = [1, 128], strides = [1, 1]} : vector<16x128xf32> to vector<1x128xf32>
    %23 = vector.extract_strided_slice %9 {offsets = [10, 0], sizes = [1, 128], strides = [1, 1]} : vector<16x128xf32> to vector<1x128xf32>
    %24 = tpu.concatenate %22, %23 in 0 : vector<1x128xf32>, vector<1x128xf32> -> vector<2x128xf32>
    %c2 = arith.constant 2 : index
    %c0_13 = arith.constant 0 : index
    %c0_14 = arith.constant 0 : index
    %25 = vector.load %arg4[%c2, %c0_13, %c0_14] : memref<8x2x128xf32, #tpu.memory_space<vmem>>, vector<1x2x128xf32>
    %26 = vector.shape_cast %25 : vector<1x2x128xf32> to vector<2x128xf32>
    %27 = vector.shape_cast %24 : vector<2x128xf32> to vector<1x2x128xf32>
    tpu.vector_store %arg4[%c2, %c0_13, %c0_14], %27 {strides = array<i32>} : memref<8x2x128xf32, #tpu.memory_space<vmem>>, vector<1x2x128xf32>,
    %28 = vector.extract_strided_slice %9 {offsets = [3, 0], sizes = [1, 128], strides = [1, 1]} : vector<16x128xf32> to vector<1x128xf32>
    %29 = vector.extract_strided_slice %9 {offsets = [11, 0], sizes = [1, 128], strides = [1, 1]} : vector<16x128xf32> to vector<1x128xf32>
    %30 = tpu.concatenate %28, %29 in 0 : vector<1x128xf32>, vector<1x128xf32> -> vector<2x128xf32>
    %c3 = arith.constant 3 : index
    %c0_15 = arith.constant 0 : index
    %c0_16 = arith.constant 0 : index
    %31 = vector.load %arg4[%c3, %c0_15, %c0_16] : memref<8x2x128xf32, #tpu.memory_space<vmem>>, vector<1x2x128xf32>
    %32 = vector.shape_cast %31 : vector<1x2x128xf32> to vector<2x128xf32>
    %33 = vector.shape_cast %30 : vector<2x128xf32> to vector<1x2x128xf32>
    tpu.vector_store %arg4[%c3, %c0_15, %c0_16], %33 {strides = array<i32>} : memref<8x2x128xf32, #tpu.memory_space<vmem>>, vector<1x2x128xf32>,
    %34 = vector.extract_strided_slice %9 {offsets = [4, 0], sizes = [1, 128], strides = [1, 1]} : vector<16x128xf32> to vector<1x128xf32>
    %35 = vector.extract_strided_slice %9 {offsets = [12, 0], sizes = [1, 128], strides = [1, 1]} : vector<16x128xf32> to vector<1x128xf32>
    %36 = tpu.concatenate %34, %35 in 0 : vector<1x128xf32>, vector<1x128xf32> -> vector<2x128xf32>
    %c4 = arith.constant 4 : index
    %c0_17 = arith.constant 0 : index
    %c0_18 = arith.constant 0 : index
    %37 = vector.load %arg4[%c4, %c0_17, %c0_18] : memref<8x2x128xf32, #tpu.memory_space<vmem>>, vector<1x2x128xf32>
    %38 = vector.shape_cast %37 : vector<1x2x128xf32> to vector<2x128xf32>
    %39 = vector.shape_cast %36 : vector<2x128xf32> to vector<1x2x128xf32>
    tpu.vector_store %arg4[%c4, %c0_17, %c0_18], %39 {strides = array<i32>} : memref<8x2x128xf32, #tpu.memory_space<vmem>>, vector<1x2x128xf32>,
    %40 = vector.extract_strided_slice %9 {offsets = [5, 0], sizes = [1, 128], strides = [1, 1]} : vector<16x128xf32> to vector<1x128xf32>
    %41 = vector.extract_strided_slice %9 {offsets = [13, 0], sizes = [1, 128], strides = [1, 1]} : vector<16x128xf32> to vector<1x128xf32>
    %42 = tpu.concatenate %40, %41 in 0 : vector<1x128xf32>, vector<1x128xf32> -> vector<2x128xf32>
    %c5 = arith.constant 5 : index
    %c0_19 = arith.constant 0 : index
    %c0_20 = arith.constant 0 : index
    %43 = vector.load %arg4[%c5, %c0_19, %c0_20] : memref<8x2x128xf32, #tpu.memory_space<vmem>>, vector<1x2x128xf32>
    %44 = vector.shape_cast %43 : vector<1x2x128xf32> to vector<2x128xf32>
    %45 = vector.shape_cast %42 : vector<2x128xf32> to vector<1x2x128xf32>
    tpu.vector_store %arg4[%c5, %c0_19, %c0_20], %45 {strides = array<i32>} : memref<8x2x128xf32, #tpu.memory_space<vmem>>, vector<1x2x128xf32>,
    %46 = vector.extract_strided_slice %9 {offsets = [6, 0], sizes = [1, 128], strides = [1, 1]} : vector<16x128xf32> to vector<1x128xf32>
    %47 = vector.extract_strided_slice %9 {offsets = [14, 0], sizes = [1, 128], strides = [1, 1]} : vector<16x128xf32> to vector<1x128xf32>
    %48 = tpu.concatenate %46, %47 in 0 : vector<1x128xf32>, vector<1x128xf32> -> vector<2x128xf32>
    %c6 = arith.constant 6 : index
    %c0_21 = arith.constant 0 : index
    %c0_22 = arith.constant 0 : index
    %49 = vector.load %arg4[%c6, %c0_21, %c0_22] : memref<8x2x128xf32, #tpu.memory_space<vmem>>, vector<1x2x128xf32>
    %50 = vector.shape_cast %49 : vector<1x2x128xf32> to vector<2x128xf32>
    %51 = vector.shape_cast %48 : vector<2x128xf32> to vector<1x2x128xf32>
    tpu.vector_store %arg4[%c6, %c0_21, %c0_22], %51 {strides = array<i32>} : memref<8x2x128xf32, #tpu.memory_space<vmem>>, vector<1x2x128xf32>,
    %52 = vector.extract_strided_slice %9 {offsets = [7, 0], sizes = [1, 128], strides = [1, 1]} : vector<16x128xf32> to vector<1x128xf32>
    %53 = vector.extract_strided_slice %9 {offsets = [15, 0], sizes = [1, 128], strides = [1, 1]} : vector<16x128xf32> to vector<1x128xf32>
    %54 = tpu.concatenate %52, %53 in 0 : vector<1x128xf32>, vector<1x128xf32> -> vector<2x128xf32>
    %c7 = arith.constant 7 : index
    %c0_23 = arith.constant 0 : index
    %c0_24 = arith.constant 0 : index
    %55 = vector.load %arg4[%c7, %c0_23, %c0_24] : memref<8x2x128xf32, #tpu.memory_space<vmem>>, vector<1x2x128xf32>
    %56 = vector.shape_cast %55 : vector<1x2x128xf32> to vector<2x128xf32>
    %57 = vector.shape_cast %54 : vector<2x128xf32> to vector<1x2x128xf32>
    tpu.vector_store %arg4[%c7, %c0_23, %c0_24], %57 {strides = array<i32>} : memref<8x2x128xf32, #tpu.memory_space<vmem>>, vector<1x2x128xf32>,
    %cst_25 = arith.constant 0.000000e+00 : f32
    %58 = vector.broadcast %cst_25 : f32 to vector<2x32xf32>
    %cst_26 = arith.constant 0.000000e+00 : f32
    %59 = vector.broadcast %cst_26 : f32 to vector<2x32xf32>
    %c0_27 = arith.constant 0 : index
    %c0_28 = arith.constant 0 : index
    %c0_29 = arith.constant 0 : index
    %60 = vector.load %arg4[%c0_27, %c0_28, %c0_29] : memref<8x2x128xf32, #tpu.memory_space<vmem>>, vector<1x2x128xf32>
    %61 = vector.shape_cast %60 : vector<1x2x128xf32> to vector<2x128xf32>
    %cst_30 = arith.constant dense<0.000000e+00> : vector<2x128xf32>
    %62 = tpu.matmul %58, %0, %cst_30 {dimension_numbers = #tpu.dot_dimension_numbers<[1], [0], [0], [1], [0, 0, 1, 1], [], []>} : vector<2x32xf32>, vector<32x128xf32>, vector<2x128xf32> -> vector<2x128xf32>
    %63 = arith.addf %61, %62 : vector<2x128xf32>
    %64 = arith.negf %63 : vector<2x128xf32>
    %65 = math.exp %64 : vector<2x128xf32>
    %cst_31 = arith.constant 1.000000e+00 : f32
    %66 = vector.broadcast %cst_31 : f32 to vector<2x128xf32>
    %67 = arith.addf %66, %65 : vector<2x128xf32>
    %68 = arith.divf %66, %67 : vector<2x128xf32>
    %69 = vector.extract_strided_slice %68 {offsets = [0, 0], sizes = [2, 32], strides = [1, 1]} : vector<2x128xf32> to vector<2x32xf32>
    %70 = vector.extract_strided_slice %68 {offsets = [0, 32], sizes = [2, 32], strides = [1, 1]} : vector<2x128xf32> to vector<2x32xf32>
    %71 = vector.extract_strided_slice %68 {offsets = [0, 96], sizes = [2, 32], strides = [1, 1]} : vector<2x128xf32> to vector<2x32xf32>
    %72 = vector.extract_strided_slice %63 {offsets = [0, 64], sizes = [2, 32], strides = [1, 1]} : vector<2x128xf32> to vector<2x32xf32>
    %73 = math.tanh %72 : vector<2x32xf32>
    %74 = arith.mulf %70, %59 : vector<2x32xf32>
    %75 = arith.mulf %69, %73 : vector<2x32xf32>
    %76 = arith.addf %74, %75 : vector<2x32xf32>
    %77 = math.tanh %76 : vector<2x32xf32>
    %78 = arith.mulf %71, %77 : vector<2x32xf32>
    %c0_32 = arith.constant 0 : index
    %c0_33 = arith.constant 0 : index
    %c0_34 = arith.constant 0 : index
    %79 = vector.load %arg5[%c0_32, %c0_33, %c0_34] : memref<8x2x32xf32, #tpu.memory_space<vmem>>, vector<1x2x32xf32>
    %80 = vector.shape_cast %79 : vector<1x2x32xf32> to vector<2x32xf32>
    %81 = vector.shape_cast %78 : vector<2x32xf32> to vector<1x2x32xf32>
    tpu.vector_store %arg5[%c0_32, %c0_33, %c0_34], %81 {strides = array<i32>} : memref<8x2x32xf32, #tpu.memory_space<vmem>>, vector<1x2x32xf32>,
    %c1_35 = arith.constant 1 : index
    %c0_36 = arith.constant 0 : index
    %c0_37 = arith.constant 0 : index
    %82 = vector.load %arg4[%c1_35, %c0_36, %c0_37] : memref<8x2x128xf32, #tpu.memory_space<vmem>>, vector<1x2x128xf32>
    %83 = vector.shape_cast %82 : vector<1x2x128xf32> to vector<2x128xf32>
    %cst_38 = arith.constant dense<0.000000e+00> : vector<2x128xf32>
    %84 = tpu.matmul %78, %0, %cst_38 {dimension_numbers = #tpu.dot_dimension_numbers<[1], [0], [0], [1], [0, 0, 1, 1], [], []>} : vector<2x32xf32>, vector<32x128xf32>, vector<2x128xf32> -> vector<2x128xf32>
    %85 = arith.addf %83, %84 : vector<2x128xf32>
    %86 = arith.negf %85 : vector<2x128xf32>
    %87 = math.exp %86 : vector<2x128xf32>
    %cst_39 = arith.constant 1.000000e+00 : f32
    %88 = vector.broadcast %cst_39 : f32 to vector<2x128xf32>
    %89 = arith.addf %88, %87 : vector<2x128xf32>
    %90 = arith.divf %88, %89 : vector<2x128xf32>
    %91 = vector.extract_strided_slice %90 {offsets = [0, 0], sizes = [2, 32], strides = [1, 1]} : vector<2x128xf32> to vector<2x32xf32>
    %92 = vector.extract_strided_slice %90 {offsets = [0, 32], sizes = [2, 32], strides = [1, 1]} : vector<2x128xf32> to vector<2x32xf32>
    %93 = vector.extract_strided_slice %90 {offsets = [0, 96], sizes = [2, 32], strides = [1, 1]} : vector<2x128xf32> to vector<2x32xf32>
    %94 = vector.extract_strided_slice %85 {offsets = [0, 64], sizes = [2, 32], strides = [1, 1]} : vector<2x128xf32> to vector<2x32xf32>
    %95 = math.tanh %94 : vector<2x32xf32>
    %96 = arith.mulf %92, %76 : vector<2x32xf32>
    %97 = arith.mulf %91, %95 : vector<2x32xf32>
    %98 = arith.addf %96, %97 : vector<2x32xf32>
    %99 = math.tanh %98 : vector<2x32xf32>
    %100 = arith.mulf %93, %99 : vector<2x32xf32>
    %c1_40 = arith.constant 1 : index
    %c0_41 = arith.constant 0 : index
    %c0_42 = arith.constant 0 : index
    %101 = vector.load %arg5[%c1_40, %c0_41, %c0_42] : memref<8x2x32xf32, #tpu.memory_space<vmem>>, vector<1x2x32xf32>
    %102 = vector.shape_cast %101 : vector<1x2x32xf32> to vector<2x32xf32>
    %103 = vector.shape_cast %100 : vector<2x32xf32> to vector<1x2x32xf32>
    tpu.vector_store %arg5[%c1_40, %c0_41, %c0_42], %103 {strides = array<i32>} : memref<8x2x32xf32, #tpu.memory_space<vmem>>, vector<1x2x32xf32>,
    %c2_43 = arith.constant 2 : index
    %c0_44 = arith.constant 0 : index
    %c0_45 = arith.constant 0 : index
    %104 = vector.load %arg4[%c2_43, %c0_44, %c0_45] : memref<8x2x128xf32, #tpu.memory_space<vmem>>, vector<1x2x128xf32>
    %105 = vector.shape_cast %104 : vector<1x2x128xf32> to vector<2x128xf32>
    %cst_46 = arith.constant dense<0.000000e+00> : vector<2x128xf32>
    %106 = tpu.matmul %100, %0, %cst_46 {dimension_numbers = #tpu.dot_dimension_numbers<[1], [0], [0], [1], [0, 0, 1, 1], [], []>} : vector<2x32xf32>, vector<32x128xf32>, vector<2x128xf32> -> vector<2x128xf32>
    %107 = arith.addf %105, %106 : vector<2x128xf32>
    %108 = arith.negf %107 : vector<2x128xf32>
    %109 = math.exp %108 : vector<2x128xf32>
    %cst_47 = arith.constant 1.000000e+00 : f32
    %110 = vector.broadcast %cst_47 : f32 to vector<2x128xf32>
    %111 = arith.addf %110, %109 : vector<2x128xf32>
    %112 = arith.divf %110, %111 : vector<2x128xf32>
    %113 = vector.extract_strided_slice %112 {offsets = [0, 0], sizes = [2, 32], strides = [1, 1]} : vector<2x128xf32> to vector<2x32xf32>
    %114 = vector.extract_strided_slice %112 {offsets = [0, 32], sizes = [2, 32], strides = [1, 1]} : vector<2x128xf32> to vector<2x32xf32>
    %115 = vector.extract_strided_slice %112 {offsets = [0, 96], sizes = [2, 32], strides = [1, 1]} : vector<2x128xf32> to vector<2x32xf32>
    %116 = vector.extract_strided_slice %107 {offsets = [0, 64], sizes = [2, 32], strides = [1, 1]} : vector<2x128xf32> to vector<2x32xf32>
    %117 = math.tanh %116 : vector<2x32xf32>
    %118 = arith.mulf %114, %98 : vector<2x32xf32>
    %119 = arith.mulf %113, %117 : vector<2x32xf32>
    %120 = arith.addf %118, %119 : vector<2x32xf32>
    %121 = math.tanh %120 : vector<2x32xf32>
    %122 = arith.mulf %115, %121 : vector<2x32xf32>
    %c2_48 = arith.constant 2 : index
    %c0_49 = arith.constant 0 : index
    %c0_50 = arith.constant 0 : index
    %123 = vector.load %arg5[%c2_48, %c0_49, %c0_50] : memref<8x2x32xf32, #tpu.memory_space<vmem>>, vector<1x2x32xf32>
    %124 = vector.shape_cast %123 : vector<1x2x32xf32> to vector<2x32xf32>
    %125 = vector.shape_cast %122 : vector<2x32xf32> to vector<1x2x32xf32>
    tpu.vector_store %arg5[%c2_48, %c0_49, %c0_50], %125 {strides = array<i32>} : memref<8x2x32xf32, #tpu.memory_space<vmem>>, vector<1x2x32xf32>,
    %c3_51 = arith.constant 3 : index
    %c0_52 = arith.constant 0 : index
    %c0_53 = arith.constant 0 : index
    %126 = vector.load %arg4[%c3_51, %c0_52, %c0_53] : memref<8x2x128xf32, #tpu.memory_space<vmem>>, vector<1x2x128xf32>
    %127 = vector.shape_cast %126 : vector<1x2x128xf32> to vector<2x128xf32>
    %cst_54 = arith.constant dense<0.000000e+00> : vector<2x128xf32>
    %128 = tpu.matmul %122, %0, %cst_54 {dimension_numbers = #tpu.dot_dimension_numbers<[1], [0], [0], [1], [0, 0, 1, 1], [], []>} : vector<2x32xf32>, vector<32x128xf32>, vector<2x128xf32> -> vector<2x128xf32>
    %129 = arith.addf %127, %128 : vector<2x128xf32>
    %130 = arith.negf %129 : vector<2x128xf32>
    %131 = math.exp %130 : vector<2x128xf32>
    %cst_55 = arith.constant 1.000000e+00 : f32
    %132 = vector.broadcast %cst_55 : f32 to vector<2x128xf32>
    %133 = arith.addf %132, %131 : vector<2x128xf32>
    %134 = arith.divf %132, %133 : vector<2x128xf32>
    %135 = vector.extract_strided_slice %134 {offsets = [0, 0], sizes = [2, 32], strides = [1, 1]} : vector<2x128xf32> to vector<2x32xf32>
    %136 = vector.extract_strided_slice %134 {offsets = [0, 32], sizes = [2, 32], strides = [1, 1]} : vector<2x128xf32> to vector<2x32xf32>
    %137 = vector.extract_strided_slice %134 {offsets = [0, 96], sizes = [2, 32], strides = [1, 1]} : vector<2x128xf32> to vector<2x32xf32>
    %138 = vector.extract_strided_slice %129 {offsets = [0, 64], sizes = [2, 32], strides = [1, 1]} : vector<2x128xf32> to vector<2x32xf32>
    %139 = math.tanh %138 : vector<2x32xf32>
    %140 = arith.mulf %136, %120 : vector<2x32xf32>
    %141 = arith.mulf %135, %139 : vector<2x32xf32>
    %142 = arith.addf %140, %141 : vector<2x32xf32>
    %143 = math.tanh %142 : vector<2x32xf32>
    %144 = arith.mulf %137, %143 : vector<2x32xf32>
    %c3_56 = arith.constant 3 : index
    %c0_57 = arith.constant 0 : index
    %c0_58 = arith.constant 0 : index
    %145 = vector.load %arg5[%c3_56, %c0_57, %c0_58] : memref<8x2x32xf32, #tpu.memory_space<vmem>>, vector<1x2x32xf32>
    %146 = vector.shape_cast %145 : vector<1x2x32xf32> to vector<2x32xf32>
    %147 = vector.shape_cast %144 : vector<2x32xf32> to vector<1x2x32xf32>
    tpu.vector_store %arg5[%c3_56, %c0_57, %c0_58], %147 {strides = array<i32>} : memref<8x2x32xf32, #tpu.memory_space<vmem>>, vector<1x2x32xf32>,
    %c4_59 = arith.constant 4 : index
    %c0_60 = arith.constant 0 : index
    %c0_61 = arith.constant 0 : index
    %148 = vector.load %arg4[%c4_59, %c0_60, %c0_61] : memref<8x2x128xf32, #tpu.memory_space<vmem>>, vector<1x2x128xf32>
    %149 = vector.shape_cast %148 : vector<1x2x128xf32> to vector<2x128xf32>
    %cst_62 = arith.constant dense<0.000000e+00> : vector<2x128xf32>
    %150 = tpu.matmul %144, %0, %cst_62 {dimension_numbers = #tpu.dot_dimension_numbers<[1], [0], [0], [1], [0, 0, 1, 1], [], []>} : vector<2x32xf32>, vector<32x128xf32>, vector<2x128xf32> -> vector<2x128xf32>
    %151 = arith.addf %149, %150 : vector<2x128xf32>
    %152 = arith.negf %151 : vector<2x128xf32>
    %153 = math.exp %152 : vector<2x128xf32>
    %cst_63 = arith.constant 1.000000e+00 : f32
    %154 = vector.broadcast %cst_63 : f32 to vector<2x128xf32>
    %155 = arith.addf %154, %153 : vector<2x128xf32>
    %156 = arith.divf %154, %155 : vector<2x128xf32>
    %157 = vector.extract_strided_slice %156 {offsets = [0, 0], sizes = [2, 32], strides = [1, 1]} : vector<2x128xf32> to vector<2x32xf32>
    %158 = vector.extract_strided_slice %156 {offsets = [0, 32], sizes = [2, 32], strides = [1, 1]} : vector<2x128xf32> to vector<2x32xf32>
    %159 = vector.extract_strided_slice %156 {offsets = [0, 96], sizes = [2, 32], strides = [1, 1]} : vector<2x128xf32> to vector<2x32xf32>
    %160 = vector.extract_strided_slice %151 {offsets = [0, 64], sizes = [2, 32], strides = [1, 1]} : vector<2x128xf32> to vector<2x32xf32>
    %161 = math.tanh %160 : vector<2x32xf32>
    %162 = arith.mulf %158, %142 : vector<2x32xf32>
    %163 = arith.mulf %157, %161 : vector<2x32xf32>
    %164 = arith.addf %162, %163 : vector<2x32xf32>
    %165 = math.tanh %164 : vector<2x32xf32>
    %166 = arith.mulf %159, %165 : vector<2x32xf32>
    %c4_64 = arith.constant 4 : index
    %c0_65 = arith.constant 0 : index
    %c0_66 = arith.constant 0 : index
    %167 = vector.load %arg5[%c4_64, %c0_65, %c0_66] : memref<8x2x32xf32, #tpu.memory_space<vmem>>, vector<1x2x32xf32>
    %168 = vector.shape_cast %167 : vector<1x2x32xf32> to vector<2x32xf32>
    %169 = vector.shape_cast %166 : vector<2x32xf32> to vector<1x2x32xf32>
    tpu.vector_store %arg5[%c4_64, %c0_65, %c0_66], %169 {strides = array<i32>} : memref<8x2x32xf32, #tpu.memory_space<vmem>>, vector<1x2x32xf32>,
    %c5_67 = arith.constant 5 : index
    %c0_68 = arith.constant 0 : index
    %c0_69 = arith.constant 0 : index
    %170 = vector.load %arg4[%c5_67, %c0_68, %c0_69] : memref<8x2x128xf32, #tpu.memory_space<vmem>>, vector<1x2x128xf32>
    %171 = vector.shape_cast %170 : vector<1x2x128xf32> to vector<2x128xf32>
    %cst_70 = arith.constant dense<0.000000e+00> : vector<2x128xf32>
    %172 = tpu.matmul %166, %0, %cst_70 {dimension_numbers = #tpu.dot_dimension_numbers<[1], [0], [0], [1], [0, 0, 1, 1], [], []>} : vector<2x32xf32>, vector<32x128xf32>, vector<2x128xf32> -> vector<2x128xf32>
    %173 = arith.addf %171, %172 : vector<2x128xf32>
    %174 = arith.negf %173 : vector<2x128xf32>
    %175 = math.exp %174 : vector<2x128xf32>
    %cst_71 = arith.constant 1.000000e+00 : f32
    %176 = vector.broadcast %cst_71 : f32 to vector<2x128xf32>
    %177 = arith.addf %176, %175 : vector<2x128xf32>
    %178 = arith.divf %176, %177 : vector<2x128xf32>
    %179 = vector.extract_strided_slice %178 {offsets = [0, 0], sizes = [2, 32], strides = [1, 1]} : vector<2x128xf32> to vector<2x32xf32>
    %180 = vector.extract_strided_slice %178 {offsets = [0, 32], sizes = [2, 32], strides = [1, 1]} : vector<2x128xf32> to vector<2x32xf32>
    %181 = vector.extract_strided_slice %178 {offsets = [0, 96], sizes = [2, 32], strides = [1, 1]} : vector<2x128xf32> to vector<2x32xf32>
    %182 = vector.extract_strided_slice %173 {offsets = [0, 64], sizes = [2, 32], strides = [1, 1]} : vector<2x128xf32> to vector<2x32xf32>
    %183 = math.tanh %182 : vector<2x32xf32>
    %184 = arith.mulf %180, %164 : vector<2x32xf32>
    %185 = arith.mulf %179, %183 : vector<2x32xf32>
    %186 = arith.addf %184, %185 : vector<2x32xf32>
    %187 = math.tanh %186 : vector<2x32xf32>
    %188 = arith.mulf %181, %187 : vector<2x32xf32>
    %c5_72 = arith.constant 5 : index
    %c0_73 = arith.constant 0 : index
    %c0_74 = arith.constant 0 : index
    %189 = vector.load %arg5[%c5_72, %c0_73, %c0_74] : memref<8x2x32xf32, #tpu.memory_space<vmem>>, vector<1x2x32xf32>
    %190 = vector.shape_cast %189 : vector<1x2x32xf32> to vector<2x32xf32>
    %191 = vector.shape_cast %188 : vector<2x32xf32> to vector<1x2x32xf32>
    tpu.vector_store %arg5[%c5_72, %c0_73, %c0_74], %191 {strides = array<i32>} : memref<8x2x32xf32, #tpu.memory_space<vmem>>, vector<1x2x32xf32>,
    %c6_75 = arith.constant 6 : index
    %c0_76 = arith.constant 0 : index
    %c0_77 = arith.constant 0 : index
    %192 = vector.load %arg4[%c6_75, %c0_76, %c0_77] : memref<8x2x128xf32, #tpu.memory_space<vmem>>, vector<1x2x128xf32>
    %193 = vector.shape_cast %192 : vector<1x2x128xf32> to vector<2x128xf32>
    %cst_78 = arith.constant dense<0.000000e+00> : vector<2x128xf32>
    %194 = tpu.matmul %188, %0, %cst_78 {dimension_numbers = #tpu.dot_dimension_numbers<[1], [0], [0], [1], [0, 0, 1, 1], [], []>} : vector<2x32xf32>, vector<32x128xf32>, vector<2x128xf32> -> vector<2x128xf32>
    %195 = arith.addf %193, %194 : vector<2x128xf32>
    %196 = arith.negf %195 : vector<2x128xf32>
    %197 = math.exp %196 : vector<2x128xf32>
    %cst_79 = arith.constant 1.000000e+00 : f32
    %198 = vector.broadcast %cst_79 : f32 to vector<2x128xf32>
    %199 = arith.addf %198, %197 : vector<2x128xf32>
    %200 = arith.divf %198, %199 : vector<2x128xf32>
    %201 = vector.extract_strided_slice %200 {offsets = [0, 0], sizes = [2, 32], strides = [1, 1]} : vector<2x128xf32> to vector<2x32xf32>
    %202 = vector.extract_strided_slice %200 {offsets = [0, 32], sizes = [2, 32], strides = [1, 1]} : vector<2x128xf32> to vector<2x32xf32>
    %203 = vector.extract_strided_slice %200 {offsets = [0, 96], sizes = [2, 32], strides = [1, 1]} : vector<2x128xf32> to vector<2x32xf32>
    %204 = vector.extract_strided_slice %195 {offsets = [0, 64], sizes = [2, 32], strides = [1, 1]} : vector<2x128xf32> to vector<2x32xf32>
    %205 = math.tanh %204 : vector<2x32xf32>
    %206 = arith.mulf %202, %186 : vector<2x32xf32>
    %207 = arith.mulf %201, %205 : vector<2x32xf32>
    %208 = arith.addf %206, %207 : vector<2x32xf32>
    %209 = math.tanh %208 : vector<2x32xf32>
    %210 = arith.mulf %203, %209 : vector<2x32xf32>
    %c6_80 = arith.constant 6 : index
    %c0_81 = arith.constant 0 : index
    %c0_82 = arith.constant 0 : index
    %211 = vector.load %arg5[%c6_80, %c0_81, %c0_82] : memref<8x2x32xf32, #tpu.memory_space<vmem>>, vector<1x2x32xf32>
    %212 = vector.shape_cast %211 : vector<1x2x32xf32> to vector<2x32xf32>
    %213 = vector.shape_cast %210 : vector<2x32xf32> to vector<1x2x32xf32>
    tpu.vector_store %arg5[%c6_80, %c0_81, %c0_82], %213 {strides = array<i32>} : memref<8x2x32xf32, #tpu.memory_space<vmem>>, vector<1x2x32xf32>,
    %c7_83 = arith.constant 7 : index
    %c0_84 = arith.constant 0 : index
    %c0_85 = arith.constant 0 : index
    %214 = vector.load %arg4[%c7_83, %c0_84, %c0_85] : memref<8x2x128xf32, #tpu.memory_space<vmem>>, vector<1x2x128xf32>
    %215 = vector.shape_cast %214 : vector<1x2x128xf32> to vector<2x128xf32>
    %cst_86 = arith.constant dense<0.000000e+00> : vector<2x128xf32>
    %216 = tpu.matmul %210, %0, %cst_86 {dimension_numbers = #tpu.dot_dimension_numbers<[1], [0], [0], [1], [0, 0, 1, 1], [], []>} : vector<2x32xf32>, vector<32x128xf32>, vector<2x128xf32> -> vector<2x128xf32>
    %217 = arith.addf %215, %216 : vector<2x128xf32>
    %218 = arith.negf %217 : vector<2x128xf32>
    %219 = math.exp %218 : vector<2x128xf32>
    %cst_87 = arith.constant 1.000000e+00 : f32
    %220 = vector.broadcast %cst_87 : f32 to vector<2x128xf32>
    %221 = arith.addf %220, %219 : vector<2x128xf32>
    %222 = arith.divf %220, %221 : vector<2x128xf32>
    %223 = vector.extract_strided_slice %222 {offsets = [0, 0], sizes = [2, 32], strides = [1, 1]} : vector<2x128xf32> to vector<2x32xf32>
    %224 = vector.extract_strided_slice %222 {offsets = [0, 32], sizes = [2, 32], strides = [1, 1]} : vector<2x128xf32> to vector<2x32xf32>
    %225 = vector.extract_strided_slice %222 {offsets = [0, 96], sizes = [2, 32], strides = [1, 1]} : vector<2x128xf32> to vector<2x32xf32>
    %226 = vector.extract_strided_slice %217 {offsets = [0, 64], sizes = [2, 32], strides = [1, 1]} : vector<2x128xf32> to vector<2x32xf32>
    %227 = math.tanh %226 : vector<2x32xf32>
    %228 = arith.mulf %224, %208 : vector<2x32xf32>
    %229 = arith.mulf %223, %227 : vector<2x32xf32>
    %230 = arith.addf %228, %229 : vector<2x32xf32>
    %231 = math.tanh %230 : vector<2x32xf32>
    %232 = arith.mulf %225, %231 : vector<2x32xf32>
    %c7_88 = arith.constant 7 : index
    %c0_89 = arith.constant 0 : index
    %c0_90 = arith.constant 0 : index
    %233 = vector.load %arg5[%c7_88, %c0_89, %c0_90] : memref<8x2x32xf32, #tpu.memory_space<vmem>>, vector<1x2x32xf32>
    %234 = vector.shape_cast %233 : vector<1x2x32xf32> to vector<2x32xf32>
    %235 = vector.shape_cast %232 : vector<2x32xf32> to vector<1x2x32xf32>
    tpu.vector_store %arg5[%c7_88, %c0_89, %c0_90], %235 {strides = array<i32>} : memref<8x2x32xf32, #tpu.memory_space<vmem>>, vector<1x2x32xf32>,
    %c0_91 = arith.constant 0 : index
    %c0_92 = arith.constant 0 : index
    %c0_93 = arith.constant 0 : index
    %236 = vector.load %arg5[%c0_91, %c0_92, %c0_93] : memref<8x2x32xf32, #tpu.memory_space<vmem>>, vector<8x2x32xf32>
    %237 = vector.extract_strided_slice %236 {offsets = [0, 0, 0], sizes = [8, 1, 32], strides = [1, 1, 1]} : vector<8x2x32xf32> to vector<8x1x32xf32>
    %238 = vector.shape_cast %237 : vector<8x1x32xf32> to vector<8x32xf32>
    %239 = vector.broadcast %3 : vector<1x32xf32> to vector<8x32xf32>
    %240 = arith.mulf %238, %239 : vector<8x32xf32>
    %cst_94 = arith.constant dense<0.000000e+00> : vector<8xf32>
    %241 = vector.multi_reduction <add>, %240, %cst_94 [1] : vector<8x32xf32> to vector<8xf32>
    %242 = vector.shape_cast %241 : vector<8xf32> to vector<8x1xf32>
    %243 = vector.broadcast %4 : vector<1x1xf32> to vector<8x1xf32>
    %244 = arith.addf %242, %243 : vector<8x1xf32>
    %c0_95 = arith.constant 0 : index
    %c0_96 = arith.constant 0 : index
    %245 = vector.load %arg3[%c0_95, %c0_96] : memref<16x1xf32, #tpu.memory_space<vmem>>, vector<8x1xf32>
    tpu.vector_store %arg3[%c0_95, %c0_96], %244 {strides = array<i32>} : memref<16x1xf32, #tpu.memory_space<vmem>>, vector<8x1xf32>,
    %246 = vector.extract_strided_slice %236 {offsets = [0, 1, 0], sizes = [8, 1, 32], strides = [1, 1, 1]} : vector<8x2x32xf32> to vector<8x1x32xf32>
    %247 = vector.shape_cast %246 : vector<8x1x32xf32> to vector<8x32xf32>
    %248 = vector.broadcast %3 : vector<1x32xf32> to vector<8x32xf32>
    %249 = arith.mulf %247, %248 : vector<8x32xf32>
    %cst_97 = arith.constant dense<0.000000e+00> : vector<8xf32>
    %250 = vector.multi_reduction <add>, %249, %cst_97 [1] : vector<8x32xf32> to vector<8xf32>
    %251 = vector.shape_cast %250 : vector<8xf32> to vector<8x1xf32>
    %252 = vector.broadcast %4 : vector<1x1xf32> to vector<8x1xf32>
    %253 = arith.addf %251, %252 : vector<8x1xf32>
    %c8 = arith.constant 8 : index
    %c0_98 = arith.constant 0 : index
    %254 = vector.load %arg3[%c8, %c0_98] : memref<16x1xf32, #tpu.memory_space<vmem>>, vector<8x1xf32>
    tpu.vector_store %arg3[%c8, %c0_98], %253 {strides = array<i32>} : memref<16x1xf32, #tpu.memory_space<vmem>>, vector<8x1xf32>,
    return
  }
  func.func @transform_0(%arg0: i32) -> (i32, i32, i32) {
    %c0_i32 = arith.constant 0 : i32
    %c0_i32_0 = arith.constant 0 : i32
    %c0_i32_1 = arith.constant 0 : i32
    %c0_i32_2 = arith.constant 0 : i32
    return %c0_i32, %c0_i32_0, %c0_i32_1 : i32, i32, i32
  }
  func.func @transform_1(%arg0: i32) -> (i32, i32) {
    %c0_i32 = arith.constant 0 : i32
    %c0_i32_0 = arith.constant 0 : i32
    %c0_i32_1 = arith.constant 0 : i32
    return %c0_i32, %c0_i32_0 : i32, i32
  }
  func.func @transform_2(%arg0: i32) -> (i32, i32) {
    %c0_i32 = arith.constant 0 : i32
    %c0_i32_0 = arith.constant 0 : i32
    %c0_i32_1 = arith.constant 0 : i32
    return %c0_i32, %c0_i32_0 : i32, i32
  }
}

</mosaic_0001>

<bundles_post_ra>
// kernel: tpu_custom_call.1
= control target key start
LH: loop header
LB: loop body
LE: loop exit
PB: predicated region body
PF: predicated region fallthrough
CT: control target
= control target key end

     0   :  { %7 = vsyncpa [#allocation5], 0  ;;  %s1401_s9 = smov [#allocation4]   ;;  %s1619_s0 = inlined_call_operand.vmem [shape: f32[2,8,4], index: 0, kind: input, shape index: {}]   ;;  %s1620_s1 = inlined_call_operand.hbm [shape: f32[39,128], index: 1, kind: input, shape index: {}]   ;;  %s1621_s2 = inlined_call_operand.vmem [shape: f32[16,1], index: 2, kind: output, shape index: {}]  }
   0x1   :  { %s15_s10 = sshll.u32 %s1401_s9, 4  ;;  %s1377_s13 = scalar_lea.hbm %s1620_s1, 640  ;;  %s16_s10 = int_to_ptr.vmem [resolvable:$true] %s15_s10 }
   0x2   :  { %p1378_p0 = scmp.ne.s32.totalorder %s1620_s1, %s1377_s13  ;;  %p1381_p1 = scmp.lt.u32.totalorder %s1377_s13, %s1620_s1 }
   0x4   :  { %p1383_p2 = pnand %p1381_p1, %p1378_p0 }
   0x6   :  { %1386 = shalt.err (!%p1383_p2)
}
   0x7   :  { %s1387_s18 = scalar_lea.vmem %s16_s10, 640  ;;  %p1392_p4 = scmp.lt.s32.totalorder %s16_s10, %s16_s10 }
   0x8   :  { %p1388_p3 = scmp.ne.s32.totalorder %s16_s10, %s1387_s18  ;;  %p1393_p5 = scmp.lt.s32.totalorder %s1387_s18, %s1387_s18 }
   0xa   :  { %p1394_p6 = por %p1393_p5, %p1392_p4 }
   0xc   :  { %p1395_p7 = pnand %p1394_p6, %p1388_p3 }
   0xe   :  { %1398 = shalt.err (!%p1395_p7)
}
   0xf   :  { %s1402_s19 = smov 128   ;;  %s1403_s20 = smov 8  }
  0x10   :  { %21 = dma.hbm_to_vmem [thread:$0]  %s1620_s1, 640, %s16_s10, [#allocation5], %s1402_s19, %s1402_s19, %s1403_s20  }
  0x11   :  { %1399 = dma.done.wait [#allocation5], 640  }
  0x12   :  { %1400 = vsyncadd [#allocation5], 4294966656  ;;  %v1404_v0 = vmov 0.0|0.0   ;;  %vm1405_vm0 = vmmov 0   ;;  %v1406_v1 = vmov 0.0   ;;  %vm46_vm1 = vcmask 1043456  }
  0x13   :  { %1257 = vmatprep.subr.bf16.mxu1 %v1404_v0  ;;  %1177 = vmatprep.mubr.msk.f32.mxu1 %vm1405_vm0, %v1406_v1  ;;  %vm39_vm2 = vcmask 31744   ;;  %v29_v2 = vld [vmem:[#allocation4 + $0x20] sm:$0xf]  ;;  %v34_v4 = vld [vmem:[%s1619_s0 + $0x8] sm:$0xff]  ;;  %v27_v7 = vld [vmem:[#allocation4 + $0x10] sm:$0xff]  ;;  %vm128_vm3 = vcmask 1040384  }
  0x14   :  { %v33_v3 = vld [vmem:[%s1619_s0] sm:$0xff]  ;;  %1164 = vmatprep.subr.msk.mxu0 %vm46_vm1, %v29_v2  ;;  %v26_v6 = vld [vmem:[#allocation4 + $0x8] sm:$0xff]  ;;  %v28_v9 = vld [vmem:[#allocation4 + $0x18] sm:$0xff]  ;;  %s1407_s0 = smov 64   ;;  %s1408_s1 = smov 32   ;;  %vm283_vm4 = vcmask 254976  }
  0x15   :  { %1166 = vmatprep.mubr.msk.f32.mxu0 %vm39_vm2, %v33_v3  ;;  %v25_v5 = vld [vmem:[#allocation4] sm:$0xff]  ;;  %1165 = vmatpush3.msk.msra.mxu0 %vm46_vm1, %v29_v2  ;;  %v1449_v10 = vpack.c.bf16 %v28_v9, %v27_v7  ;;  %vm180_vm5 = vcmask 261120   ;;  %vm1042_vm6 = vcmask 1041409   ;;  %vm1045_vm7 = vcmask 1042434  }
  0x16   :  { %v1445_v8 = vpack.c.bf16 %v26_v6, %v25_v5  ;;  %1167 = vmatmul.mubr.msk.f32.vlgmr.msra.gmra.mrb[0].mxu0 %vm39_vm2, %v34_v4  ;;  %1263 = vmatprep.subr.bf16.mxu0 %v1404_v0  ;;  %v1100_v11 = vld [vmem:[#allocation4 + $0x24] ss:$0 sm:$0xff]  ;;  %vm1048_vm8 = vcmask 1043459   ;;  %vm1051_vm9 = vcmask 1044484   ;;  %vm1054_vm10 = vcmask 1045509  }
  0x17   :  { %1188 = vmatprep.mubr.msk.f32.mxu0 %vm1405_vm0, %v1406_v1  ;;  %vm1057_vm11 = vcmask 1046534   ;;  %vm1060_vm12 = vcmask 1047559   ;;  %vm1081_vm13 = vcmask 261121   ;;  %vm1085_vm14 = vcmask 253952  }
  0x18   :  { %1259 = vmatpush3.bf16.msra.mxu1 %v1445_v8  ;;  %1265 = vmatpush3.bf16.msra.mxu0 %v1445_v8  ;;  %vm1091_vm15 = vcmask 7169   ;;  %vm1093_vm1 = vcmask 0  }
  0x19   :  { %1260 = vmatprep.subr.bf16.mxu1 %v1404_v0  ;;  %1266 = vmatprep.subr.bf16.mxu0 %v1404_v0 }
  0x1c   :  { %1262 = vmatpush3.bf16.msra.mxu1 %v1449_v10  ;;  %1268 = vmatpush3.bf16.msra.mxu0 %v1449_v10 }
  0x1d   :  { %1269 = vmatprep.subr.bf16.mxu1 %v1404_v0  ;;  %1275 = vmatprep.subr.bf16.mxu0 %v1404_v0 }
  0x1f   :  { %1178 = vmatmul.mubr.f32.vlgmr.msra.gmra.mrb[0].mxu1 %v1406_v1 }
  0x20   :  { %1271 = vmatpush3.bf16.msra.mxu1 %v1445_v8  ;;  %1199 = vmatprep.mubr.msk.f32.mxu1 %vm1405_vm0, %v1406_v1 }
  0x21   :  { %1272 = vmatprep.subr.bf16.mxu1 %v1404_v0 }
  0x24   :  { %1274 = vmatpush3.bf16.msra.mxu1 %v1449_v10 }
  0x25   :  { %1281 = vmatprep.subr.bf16.mxu1 %v1404_v0 }
  0xe9   :  { %v1168_v12 = vpop.f32.mrb[0].mxu0 }
  0xea   :  { %v122_v13 = vadd.f32 %v1168_v12, %v1100_v11  ;;  %v116_v14 = vpop.f32.mrb[1].mxu0 }
  0xeb   :  { %v117_v15 = vadd.f32 %v1100_v11, %v116_v14  ;;  %v1499_v14 = vld [vmem:[#allocation4 + $0x25] ss:$0 sm:$0xff] }
  0xec   :  { %v126_v16 = vrot.slane %v122_v13, 7  ;;  %v139_v17 = vrot.slane %v122_v13, 1  ;;  %v146_v18 = vrot.slane %v122_v13, 2  ;;  %v153_v19 = vrot.slane %v122_v13, 3 }
  0xed   :  { %v160_v20 = vrot.slane %v122_v13, 4  ;;  %v167_v21 = vrot.slane %v122_v13, 5  ;;  %v174_v22 = vrot.slane %v122_v13, 6  ;;  %v132_v23 = vrot.slane %v117_v15, 1 }
  0xee   :  { %v129_v24 = vsel %vm128_vm3, %v117_v15, %v126_v16  ;;  %v137_v25 = vrot.slane %v117_v15, 2  ;;  %v144_v26 = vrot.slane %v117_v15, 3  ;;  %v151_v27 = vrot.slane %v117_v15, 4 }
  0xef   :  { %v158_v28 = vrot.slane %v117_v15, 5  ;;  %v165_v29 = vrot.slane %v117_v15, 6  ;;  %v172_v30 = vrot.slane %v117_v15, 7  ;;  %130 = vst [vmem:[#allocation2] sm:$0x3] %v129_v24  ;;  %v134_v31 = vsel %vm128_vm3, %v132_v23, %v122_v13 }
  0xf0   :  { %136 = vst [vmem:[#allocation2 + $0x2] sm:$0x3] %v134_v31  ;;  %v141_v32 = vsel %vm128_vm3, %v137_v25, %v139_v17  ;;  %v148_v33 = vsel %vm128_vm3, %v144_v26, %v146_v18  ;;  %v155_v34 = vsel %vm128_vm3, %v151_v27, %v153_v19 }
  0xf1   :  { %143 = vst [vmem:[#allocation2 + $0x4] sm:$0x3] %v141_v32  ;;  %150 = vst [vmem:[#allocation2 + $0x6] sm:$0x3] %v148_v33  ;;  %v162_v36 = vsel %vm128_vm3, %v158_v28, %v160_v20  ;;  %v169_v37 = vsel %vm128_vm3, %v165_v29, %v167_v21  ;;  %v176_v38 = vsel %vm128_vm3, %v172_v30, %v174_v22 }
  0xf2   :  { %v250_v35 = vpop.f32.mrb[0].mxu1  ;;  %157 = vst [vmem:[#allocation2 + $0x8] sm:$0x3] %v155_v34  ;;  %164 = vst [vmem:[#allocation2 + $0xa] sm:$0x3] %v162_v36 }
  0xf3   :  { %v1179_v39 = vpop.f32.mrb[1].mxu1  ;;  %171 = vst [vmem:[#allocation2 + $0xc] sm:$0x3] %v169_v37  ;;  %178 = vst [vmem:[#allocation2 + $0xe] sm:$0x3] %v176_v38 }
  0xf6   :  { %v179_v40 = vld [vmem:[#allocation2] sm:$0x3] }
  0xf7   :  { %v254_v41 = vadd.f32 %v250_v35, %v179_v40  ;;  %v285_v56 = vld [vmem:[#allocation2 + $0x2] sm:$0x3] }
  0xf8   :  { %v389_v21 = vld [vmem:[#allocation2 + $0x4] sm:$0x3] }
  0xf9   :  { %1313 = vtanh.f32 %v254_v41  ;;  %v1104_v43 = vmul.f32 -1.442695, %v254_v41 }
  0xfb   :  { %1315 = vpow2.f32 %v1104_v43  ;;  %v493_v43 = vld [vmem:[#allocation2 + $0x6] sm:$0x3] }
 0x103   :  { %v1314_v42 = vpop.eup %1313 }
 0x104   :  { %264 = vrot.lane.b32.xlu0 %v1314_v42, %s1407_s0 }
 0x105   :  { %v1316_v44 = vpop.eup %1315 }
 0x106   :  { %v258_v45 = vadd.f32 1.0, %v1316_v44 }
 0x108   :  { %1317 = vrcp.f32 %v258_v45 }
 0x112   :  { %v1318_v46 = vpop.eup %1317 }
 0x113   :  { %v262_v49 = vmul.f32 0.0, %v1318_v46 }
 0x176   :  { %v265_v47 = vpop.permute.xlu0 %264 }
 0x177   :  { %v267_v48 = vmul.f32 %v1318_v46, %v265_v47 }
 0x179   :  { %269 = vrot.lane.b32.xlu0 %v267_v48, %s1408_s1 }
 0x1eb   :  { %v270_v50 = vpop.permute.xlu0 %269 }
 0x1ec   :  { %v272_v51 = vadd.f32 %v270_v50, %v262_v49 }
 0x1ee   :  { %1319 = vtanh.f32 %v272_v51 }
 0x1f8   :  { %v1320_v52 = vpop.eup %1319 }
 0x1f9   :  { %275 = vrot.lane.b32.xlu1 %v1320_v52, %s1407_s0 }
 0x26b   :  { %v276_v53 = vpop.permute.xlu1 %275 }
 0x26c   :  { %v278_v54 = vmul.f32 %v1318_v46, %v276_v53 }
 0x26e   :  { %280 = vrot.lane.b32.xlu1 %v278_v54, %s1408_s1 }
 0x2e0   :  { %v281_v55 = vpop.permute.xlu1 %280 }
 0x2e1   :  { %284 = vst.msk [vmem:[#allocation3] sm:$0x3] %vm283_vm4, %v281_v55  ;;  %1189 = vmatmul.mubr.msk.f32.vlgmr.msra.gmra.mrb[2].mxu0 %vm180_vm5, %v281_v55 }
 0x2e2   :  { %1277 = vmatpush3.bf16.msra.mxu0 %v1445_v8  ;;  %1210 = vmatprep.mubr.msk.f32.mxu0 %vm1405_vm0, %v1406_v1 }
 0x2e3   :  { %1278 = vmatprep.subr.bf16.mxu0 %v1404_v0 }
 0x2e6   :  { %1280 = vmatpush3.bf16.msra.mxu0 %v1449_v10 }
 0x2e7   :  { %1287 = vmatprep.subr.bf16.mxu0 %v1404_v0 }
 0x2e8   :  { %v1013_v15 = vld [vmem:[#allocation3] sm:$0x3] }
 0x2e9   :  { %v1505_v18 = vmul.f32 %v1499_v14, %v1013_v15 }
 0x3b4   :  { %v354_v57 = vpop.f32.mrb[2].mxu0 }
 0x3b5   :  { %v358_v58 = vadd.f32 %v354_v57, %v285_v56  ;;  %v1190_v59 = vpop.f32.mrb[3].mxu0 }
 0x3b7   :  { %1321 = vtanh.f32 %v358_v58  ;;  %v1106_v61 = vmul.f32 -1.442695, %v358_v58 }
 0x3b9   :  { %1323 = vpow2.f32 %v1106_v61 }
 0x3c1   :  { %v1322_v60 = vpop.eup %1321 }
 0x3c2   :  { %368 = vrot.lane.b32.xlu0 %v1322_v60, %s1407_s0 }
 0x3c3   :  { %v1324_v62 = vpop.eup %1323 }
 0x3c4   :  { %v362_v63 = vadd.f32 1.0, %v1324_v62 }
 0x3c6   :  { %1325 = vrcp.f32 %v362_v63 }
 0x3d0   :  { %v1326_v2 = vpop.eup %1325 }
 0x3d1   :  { %v366_v5 = vmul.f32 %v1326_v2, %v272_v51 }
 0x434   :  { %v369_v3 = vpop.permute.xlu0 %368 }
 0x435   :  { %v371_v4 = vmul.f32 %v1326_v2, %v369_v3  ;;  %v597_v3 = vld [vmem:[#allocation2 + $0x8] sm:$0x3] }
 0x437   :  { %373 = vrot.lane.b32.xlu1 %v371_v4, %s1408_s1 }
 0x4a9   :  { %v374_v6 = vpop.permute.xlu1 %373 }
 0x4aa   :  { %v376_v7 = vadd.f32 %v374_v6, %v366_v5 }
 0x4ac   :  { %1327 = vtanh.f32 %v376_v7 }
 0x4b6   :  { %v1328_v9 = vpop.eup %1327 }
 0x4b7   :  { %379 = vrot.lane.b32.xlu0 %v1328_v9, %s1407_s0 }
 0x529   :  { %v380_v11 = vpop.permute.xlu0 %379 }
 0x52a   :  { %v382_v12 = vmul.f32 %v1326_v2, %v380_v11 }
 0x52c   :  { %384 = vrot.lane.b32.xlu1 %v382_v12, %s1408_s1 }
 0x59e   :  { %v385_v13 = vpop.permute.xlu1 %384 }
 0x59f   :  { %388 = vst.msk [vmem:[#allocation3 + $0x2] sm:$0x3] %vm283_vm4, %v385_v13  ;;  %1200 = vmatmul.mubr.msk.f32.vlgmr.msra.gmra.mrb[2].mxu1 %vm180_vm5, %v385_v13 }
 0x5a0   :  { %1283 = vmatpush3.bf16.msra.mxu1 %v1445_v8  ;;  %1221 = vmatprep.mubr.msk.f32.mxu1 %vm1405_vm0, %v1406_v1 }
 0x5a1   :  { %1284 = vmatprep.subr.bf16.mxu1 %v1404_v0 }
 0x5a4   :  { %1286 = vmatpush3.bf16.msra.mxu1 %v1449_v10 }
 0x5a5   :  { %1293 = vmatprep.subr.bf16.mxu1 %v1404_v0 }
 0x5a6   :  { %v1014_v16 = vld [vmem:[#allocation3 + $0x2] sm:$0x3] }
 0x5a7   :  { %v1502_v17 = vmul.f32 %v1499_v14, %v1014_v16 }
 0x5a9   :  { %v1041_v19 = vrot.slane %v1502_v17, 7 }
 0x5ab   :  { %v1043_v20 = vsel %vm1042_vm6, %v1041_v19, %v1505_v18 }
 0x672   :  { %v458_v22 = vpop.f32.mrb[2].mxu1 }
 0x673   :  { %v462_v23 = vadd.f32 %v458_v22, %v389_v21  ;;  %v1201_v24 = vpop.f32.mrb[3].mxu1 }
 0x675   :  { %1329 = vtanh.f32 %v462_v23  ;;  %v1108_v26 = vmul.f32 -1.442695, %v462_v23 }
 0x677   :  { %1331 = vpow2.f32 %v1108_v26 }
 0x67f   :  { %v1330_v25 = vpop.eup %1329 }
 0x680   :  { %472 = vrot.lane.b32.xlu0 %v1330_v25, %s1407_s0 }
 0x681   :  { %v1332_v27 = vpop.eup %1331 }
 0x682   :  { %v466_v28 = vadd.f32 1.0, %v1332_v27 }
 0x684   :  { %1333 = vrcp.f32 %v466_v28 }
 0x68e   :  { %v1334_v29 = vpop.eup %1333 }
 0x68f   :  { %v470_v32 = vmul.f32 %v1334_v29, %v376_v7 }
 0x6f2   :  { %v473_v30 = vpop.permute.xlu0 %472 }
 0x6f3   :  { %v475_v31 = vmul.f32 %v1334_v29, %v473_v30 }
 0x6f5   :  { %477 = vrot.lane.b32.xlu1 %v475_v31, %s1408_s1  ;;  %v701_v31 = vld [vmem:[#allocation2 + $0xa] sm:$0x3] }
 0x767   :  { %v478_v33 = vpop.permute.xlu1 %477 }
 0x768   :  { %v480_v34 = vadd.f32 %v478_v33, %v470_v32 }
 0x76a   :  { %1335 = vtanh.f32 %v480_v34 }
 0x774   :  { %v1336_v35 = vpop.eup %1335 }
 0x775   :  { %483 = vrot.lane.b32.xlu0 %v1336_v35, %s1407_s0 }
 0x7e7   :  { %v484_v36 = vpop.permute.xlu0 %483 }
 0x7e8   :  { %v486_v37 = vmul.f32 %v1334_v29, %v484_v36 }
 0x7ea   :  { %488 = vrot.lane.b32.xlu1 %v486_v37, %s1408_s1 }
 0x85c   :  { %v489_v38 = vpop.permute.xlu1 %488 }
 0x85d   :  { %492 = vst.msk [vmem:[#allocation3 + $0x4] sm:$0x3] %vm283_vm4, %v489_v38  ;;  %1211 = vmatmul.mubr.msk.f32.vlgmr.msra.gmra.mrb[4].mxu0 %vm180_vm5, %v489_v38 }
 0x85e   :  { %1289 = vmatpush3.bf16.msra.mxu0 %v1445_v8  ;;  %1232 = vmatprep.mubr.msk.f32.mxu0 %vm1405_vm0, %v1406_v1 }
 0x85f   :  { %1290 = vmatprep.subr.bf16.mxu0 %v1404_v0 }
 0x862   :  { %1292 = vmatpush3.bf16.msra.mxu0 %v1449_v10 }
 0x863   :  { %1299 = vmatprep.subr.bf16.mxu0 %v1404_v0 }
 0x864   :  { %v1015_v39 = vld [vmem:[#allocation3 + $0x4] sm:$0x3] }
 0x865   :  { %v1524_v40 = vmul.f32 %v1499_v14, %v1015_v39 }
 0x867   :  { %v1044_v41 = vrot.slane %v1524_v40, 6 }
 0x869   :  { %v1046_v42 = vsel %vm1045_vm7, %v1044_v41, %v1043_v20 }
 0x930   :  { %v562_v44 = vpop.f32.mrb[4].mxu0 }
 0x931   :  { %v566_v45 = vadd.f32 %v562_v44, %v493_v43  ;;  %v1212_v46 = vpop.f32.mrb[5].mxu0 }
 0x933   :  { %1337 = vtanh.f32 %v566_v45  ;;  %v1110_v48 = vmul.f32 -1.442695, %v566_v45 }
 0x935   :  { %1339 = vpow2.f32 %v1110_v48 }
 0x93d   :  { %v1338_v47 = vpop.eup %1337 }
 0x93e   :  { %576 = vrot.lane.b32.xlu0 %v1338_v47, %s1407_s0 }
 0x93f   :  { %v1340_v49 = vpop.eup %1339 }
 0x940   :  { %v570_v50 = vadd.f32 1.0, %v1340_v49 }
 0x942   :  { %1341 = vrcp.f32 %v570_v50 }
 0x94c   :  { %v1342_v51 = vpop.eup %1341 }
 0x94d   :  { %v574_v54 = vmul.f32 %v1342_v51, %v480_v34 }
 0x9b0   :  { %v577_v52 = vpop.permute.xlu0 %576 }
 0x9b1   :  { %v579_v53 = vmul.f32 %v1342_v51, %v577_v52 }
 0x9b3   :  { %581 = vrot.lane.b32.xlu1 %v579_v53, %s1408_s1 }
 0xa25   :  { %v582_v55 = vpop.permute.xlu1 %581 }
 0xa26   :  { %v584_v56 = vadd.f32 %v582_v55, %v574_v54 }
 0xa28   :  { %1343 = vtanh.f32 %v584_v56 }
 0xa32   :  { %v1344_v57 = vpop.eup %1343 }
 0xa33   :  { %587 = vrot.lane.b32.xlu0 %v1344_v57, %s1407_s0 }
 0xaa5   :  { %v588_v58 = vpop.permute.xlu0 %587 }
 0xaa6   :  { %v590_v59 = vmul.f32 %v1342_v51, %v588_v58  ;;  %v805_v51 = vld [vmem:[#allocation2 + $0xc] sm:$0x3] }
 0xaa8   :  { %592 = vrot.lane.b32.xlu1 %v590_v59, %s1408_s1 }
 0xb1a   :  { %v593_v60 = vpop.permute.xlu1 %592 }
 0xb1b   :  { %596 = vst.msk [vmem:[#allocation3 + $0x6] sm:$0x3] %vm283_vm4, %v593_v60  ;;  %1222 = vmatmul.mubr.msk.f32.vlgmr.msra.gmra.mrb[4].mxu1 %vm180_vm5, %v593_v60 }
 0xb1c   :  { %1295 = vmatpush3.bf16.msra.mxu1 %v1445_v8  ;;  %1243 = vmatprep.mubr.msk.f32.mxu1 %vm1405_vm0, %v1406_v1 }
 0xb1d   :  { %1296 = vmatprep.subr.bf16.mxu1 %v1404_v0 }
 0xb20   :  { %1298 = vmatpush3.bf16.msra.mxu1 %v1449_v10 }
 0xb22   :  { %v1016_v61 = vld [vmem:[#allocation3 + $0x6] sm:$0x3] }
 0xb23   :  { %v1542_v62 = vmul.f32 %v1499_v14, %v1016_v61 }
 0xb25   :  { %v1047_v63 = vrot.slane %v1542_v62, 5 }
 0xb27   :  { %v1049_v2 = vsel %vm1048_vm8, %v1047_v63, %v1046_v42 }
 0xbee   :  { %v666_v4 = vpop.f32.mrb[4].mxu1 }
 0xbef   :  { %v670_v5 = vadd.f32 %v666_v4, %v597_v3  ;;  %v1223_v6 = vpop.f32.mrb[5].mxu1 }
 0xbf1   :  { %1345 = vtanh.f32 %v670_v5  ;;  %v1112_v9 = vmul.f32 -1.442695, %v670_v5 }
 0xbf3   :  { %1347 = vpow2.f32 %v1112_v9 }
 0xbfb   :  { %v1346_v7 = vpop.eup %1345 }
 0xbfc   :  { %680 = vrot.lane.b32.xlu0 %v1346_v7, %s1407_s0 }
 0xbfd   :  { %v1348_v11 = vpop.eup %1347 }
 0xbfe   :  { %v674_v12 = vadd.f32 1.0, %v1348_v11 }
 0xc00   :  { %1349 = vrcp.f32 %v674_v12 }
 0xc0a   :  { %v1350_v13 = vpop.eup %1349 }
 0xc0b   :  { %v678_v20 = vmul.f32 %v1350_v13, %v584_v56 }
 0xc6e   :  { %v681_v15 = vpop.permute.xlu0 %680 }
 0xc6f   :  { %v683_v16 = vmul.f32 %v1350_v13, %v681_v15 }
 0xc71   :  { %685 = vrot.lane.b32.xlu1 %v683_v16, %s1408_s1  ;;  %v909_v16 = vld [vmem:[#allocation2 + $0xe] sm:$0x3] }
 0xce3   :  { %v686_v21 = vpop.permute.xlu1 %685 }
 0xce4   :  { %v688_v22 = vadd.f32 %v686_v21, %v678_v20 }
 0xce6   :  { %1351 = vtanh.f32 %v688_v22 }
 0xcf0   :  { %v1352_v23 = vpop.eup %1351 }
 0xcf1   :  { %691 = vrot.lane.b32.xlu0 %v1352_v23, %s1407_s0 }
 0xd63   :  { %v692_v24 = vpop.permute.xlu0 %691 }
 0xd64   :  { %v694_v25 = vmul.f32 %v1350_v13, %v692_v24 }
 0xd66   :  { %696 = vrot.lane.b32.xlu1 %v694_v25, %s1408_s1 }
 0xdd8   :  { %v697_v26 = vpop.permute.xlu1 %696 }
 0xdd9   :  { %700 = vst.msk [vmem:[#allocation3 + $0x8] sm:$0x3] %vm283_vm4, %v697_v26  ;;  %1233 = vmatmul.mubr.msk.f32.vlgmr.msra.gmra.mrb[6].mxu0 %vm180_vm5, %v697_v26 }
 0xdda   :  { %1301 = vmatpush3.bf16.msra.mxu0 %v1445_v8  ;;  %1254 = vmatprep.mubr.msk.f32.mxu0 %vm1405_vm0, %v1406_v1  ;;  %vm1071_vm0 = vcmask 7168  }
 0xddb   :  { %1302 = vmatprep.subr.bf16.mxu0 %v1404_v0 }
 0xdde   :  { %1304 = vmatpush3.bf16.msra.mxu0 %v1449_v10 }
 0xde0   :  { %v1017_v27 = vld [vmem:[#allocation3 + $0x8] sm:$0x3] }
 0xde1   :  { %v1560_v28 = vmul.f32 %v1499_v14, %v1017_v27 }
 0xde3   :  { %v1050_v29 = vrot.slane %v1560_v28, 4 }
 0xde5   :  { %v1052_v30 = vsel %vm1051_vm9, %v1050_v29, %v1049_v2 }
 0xeac   :  { %v770_v8 = vpop.f32.mrb[6].mxu0 }
 0xead   :  { %v774_v32 = vadd.f32 %v770_v8, %v701_v31  ;;  %v1234_v33 = vpop.f32.mrb[7].mxu0 }
 0xeaf   :  { %1353 = vtanh.f32 %v774_v32  ;;  %v1114_v0 = vmul.f32 -1.442695, %v774_v32 }
 0xeb1   :  { %1355 = vpow2.f32 %v1114_v0 }
 0xeb9   :  { %v1354_v1 = vpop.eup %1353 }
 0xeba   :  { %784 = vrot.lane.b32.xlu0 %v1354_v1, %s1407_s0 }
 0xebb   :  { %v1356_v10 = vpop.eup %1355 }
 0xebc   :  { %v778_v34 = vadd.f32 1.0, %v1356_v10 }
 0xebe   :  { %1357 = vrcp.f32 %v778_v34  ;;  %v1073_v34 = vsel %vm1045_vm7, %v1041_v19, %v1505_v18 }
 0xec8   :  { %v1358_v35 = vpop.eup %1357 }
 0xec9   :  { %v782_v38 = vmul.f32 %v1358_v35, %v688_v22 }
 0xf2c   :  { %v785_v36 = vpop.permute.xlu0 %784 }
 0xf2d   :  { %v787_v37 = vmul.f32 %v1358_v35, %v785_v36 }
 0xf2f   :  { %789 = vrot.lane.b32.xlu1 %v787_v37, %s1408_s1 }
 0xfa1   :  { %v790_v39 = vpop.permute.xlu1 %789 }
 0xfa2   :  { %v792_v42 = vadd.f32 %v790_v39, %v782_v38  ;;  %v1120_v39 = vld [vmem:[#allocation4 + $0x26] ss:$0 sm:$0xff] }
 0xfa4   :  { %1359 = vtanh.f32 %v792_v42 }
 0xfae   :  { %v1360_v43 = vpop.eup %1359 }
 0xfaf   :  { %795 = vrot.lane.b32.xlu0 %v1360_v43, %s1407_s0 }
0x1021   :  { %v796_v44 = vpop.permute.xlu0 %795 }
0x1022   :  { %v798_v45 = vmul.f32 %v1358_v35, %v796_v44  ;;  %v1074_v35 = vsel %vm1048_vm8, %v1044_v41, %v1073_v34 }
0x1023   :  { %v1075_v36 = vsel %vm1051_vm9, %v1047_v63, %v1074_v35 }
0x1024   :  { %800 = vrot.lane.b32.xlu1 %v798_v45, %s1408_s1  ;;  %v1076_v37 = vsel %vm1054_vm10, %v1050_v29, %v1075_v36 }
0x1096   :  { %v801_v46 = vpop.permute.xlu1 %800 }
0x1097   :  { %804 = vst.msk [vmem:[#allocation3 + $0xa] sm:$0x3] %vm283_vm4, %v801_v46  ;;  %1244 = vmatmul.mubr.msk.f32.vlgmr.msra.gmra.mrb[6].mxu1 %vm180_vm5, %v801_v46 }
0x109e   :  { %v1018_v47 = vld [vmem:[#allocation3 + $0xa] sm:$0x3] }
0x109f   :  { %v1573_v48 = vmul.f32 %v1499_v14, %v1018_v47 }
0x10a1   :  { %v1053_v49 = vrot.slane %v1573_v48, 3 }
0x10a3   :  { %v1055_v50 = vsel %vm1054_vm10, %v1053_v49, %v1052_v30  ;;  %v1077_v38 = vsel %vm1057_vm11, %v1053_v49, %v1076_v37 }
0x116a   :  { %v874_v52 = vpop.f32.mrb[6].mxu1 }
0x116b   :  { %v878_v53 = vadd.f32 %v874_v52, %v805_v51  ;;  %v1245_v54 = vpop.f32.mrb[7].mxu1 }
0x116d   :  { %1361 = vtanh.f32 %v878_v53  ;;  %v1116_v56 = vmul.f32 -1.442695, %v878_v53 }
0x116f   :  { %1363 = vpow2.f32 %v1116_v56 }
0x1177   :  { %v1362_v55 = vpop.eup %1361 }
0x1178   :  { %888 = vrot.lane.b32.xlu0 %v1362_v55, %s1407_s0 }
0x1179   :  { %v1364_v57 = vpop.eup %1363 }
0x117a   :  { %v882_v58 = vadd.f32 1.0, %v1364_v57 }
0x117c   :  { %1365 = vrcp.f32 %v882_v58 }
0x1186   :  { %v1366_v59 = vpop.eup %1365 }
0x1187   :  { %v886_v2 = vmul.f32 %v1366_v59, %v792_v42 }
0x11ea   :  { %v889_v60 = vpop.permute.xlu0 %888 }
0x11eb   :  { %v891_v61 = vmul.f32 %v1366_v59, %v889_v60 }
0x11ed   :  { %893 = vrot.lane.b32.xlu1 %v891_v61, %s1408_s1 }
0x125f   :  { %v894_v3 = vpop.permute.xlu1 %893 }
0x1260   :  { %v896_v4 = vadd.f32 %v894_v3, %v886_v2 }
0x1262   :  { %1367 = vtanh.f32 %v896_v4 }
0x126c   :  { %v1368_v5 = vpop.eup %1367 }
0x126d   :  { %899 = vrot.lane.b32.xlu0 %v1368_v5, %s1407_s0 }
0x12df   :  { %v900_v6 = vpop.permute.xlu0 %899 }
0x12e0   :  { %v902_v7 = vmul.f32 %v1366_v59, %v900_v6 }
0x12e2   :  { %904 = vrot.lane.b32.xlu1 %v902_v7, %s1408_s1 }
0x1354   :  { %v905_v9 = vpop.permute.xlu1 %904 }
0x1355   :  { %908 = vst.msk [vmem:[#allocation3 + $0xc] sm:$0x3] %vm283_vm4, %v905_v9  ;;  %1255 = vmatmul.mubr.msk.f32.vlgmr.msra.gmra.mrb[8].mxu0 %vm180_vm5, %v905_v9 }
0x135c   :  { %v1019_v11 = vld [vmem:[#allocation3 + $0xc] sm:$0x3] }
0x135d   :  { %v1031_v12 = vmul.f32 %v1499_v14, %v1019_v11 }
0x135f   :  { %v1056_v13 = vrot.slane %v1031_v12, 2 }
0x1361   :  { %v1058_v15 = vsel %vm1057_vm11, %v1056_v13, %v1055_v50  ;;  %v1078_v17 = vsel %vm1060_vm12, %v1056_v13, %v1077_v38 }
0x1362   :  { %v1082_v18 = vsel %vm1081_vm13, %v1078_v17, 0.0 }
0x1428   :  { %v978_v20 = vpop.f32.mrb[8].mxu0 }
0x1429   :  { %v982_v21 = vadd.f32 %v978_v20, %v909_v16  ;;  %v1256_v22 = vpop.f32.mrb[9].mxu0 }
0x142b   :  { %1369 = vtanh.f32 %v982_v21  ;;  %v1118_v24 = vmul.f32 -1.442695, %v982_v21 }
0x142d   :  { %1371 = vpow2.f32 %v1118_v24 }
0x1435   :  { %v1370_v23 = vpop.eup %1369 }
0x1436   :  { %992 = vrot.lane.b32.xlu0 %v1370_v23, %s1407_s0 }
0x1437   :  { %v1372_v25 = vpop.eup %1371 }
0x1438   :  { %v986_v26 = vadd.f32 1.0, %v1372_v25 }
0x143a   :  { %1373 = vrcp.f32 %v986_v26 }
0x1444   :  { %v1374_v27 = vpop.eup %1373 }
0x1445   :  { %v990_v8 = vmul.f32 %v1374_v27, %v896_v4 }
0x14a8   :  { %v993_v30 = vpop.permute.xlu0 %992 }
0x14a9   :  { %v995_v31 = vmul.f32 %v1374_v27, %v993_v30 }
0x14ab   :  { %997 = vrot.lane.b32.xlu1 %v995_v31, %s1408_s1 }
0x151d   :  { %v998_v32 = vpop.permute.xlu1 %997 }
0x151e   :  { %v1000_v33 = vadd.f32 %v998_v32, %v990_v8 }
0x1520   :  { %1375 = vtanh.f32 %v1000_v33 }
0x152a   :  { %v1376_v1 = vpop.eup %1375 }
0x152b   :  { %1003 = vrot.lane.b32.xlu0 %v1376_v1, %s1407_s0 }
0x159d   :  { %v1004_v0 = vpop.permute.xlu0 %1003 }
0x159e   :  { %v1006_v10 = vmul.f32 %v1374_v27, %v1004_v0 }
0x15a0   :  { %1008 = vrot.lane.b32.xlu1 %v1006_v10, %s1408_s1 }
0x15c4   :  { %1083 = vadd.xlane.f32.xlu1 %v1082_v18 }
0x1612   :  { %v1009_v19 = vpop.permute.xlu1 %1008 }
0x1613   :  { %1012 = vst.msk [vmem:[#allocation3 + $0xe] sm:$0x3] %vm283_vm4, %v1009_v19 }
0x161a   :  { %v1020_v40 = vld [vmem:[#allocation3 + $0xe] sm:$0x3] }
0x161b   :  { %v1032_v41 = vmul.f32 %v1499_v14, %v1020_v40 }
0x161d   :  { %v1059_v62 = vrot.slane %v1032_v41, 1 }
0x161f   :  { %v1061_v63 = vsel %vm1060_vm12, %v1059_v62, %v1058_v15  ;;  %v1086_v29 = vsel %vm1085_vm14, %v1059_v62, 0.0 }
0x1620   :  { %v1063_v28 = vsel %vm180_vm5, %v1061_v63, 0.0 }
0x1621   :  { %1064 = vadd.xlane.f32.xlu0 %v1063_v28 }
0x1625   :  { %1087 = vadd.xlane.f32.xlu0 %v1086_v29 }
0x1651   :  { %v1084_v42 = vpop.xlane.xlu1 %1083 }
0x1652   :  { %v1089_v43 = vadd.f32 %v1120_v39, %v1084_v42 }
0x1654   :  { %1092 = vst.msk [vmem:[%s1621_s2 + $0x7] sm:$0xfe] %vm1091_vm15, %v1089_v43 }
0x16ae   :  { %v1065_v44 = vpop.xlane.xlu0 %1064 }
0x16af   :  { %v1070_v45 = vadd.f32 %v1120_v39, %v1065_v44 }
0x16b1   :  { %1072 = vst.msk [vmem:[%s1621_s2] sm:$0xff] %vm1071_vm0, %v1070_v45 }
0x16b2   :  { %v1088_v14 = vpop.xlane.xlu0 %1087 }
0x16b3   :  { %v1090_v46 = vadd.f32 %v1120_v39, %v1088_v14 }
0x16b5   :  { %1094 = vst.msk [vmem:[%s1621_s2 + $0xf] sm:$0x1] %vm1093_vm1, %v1090_v46 }
0x16b6   :  { %1099 = vsyncpa [#allocation5], 1 }

</bundles_post_ra>
